<compile_context>
chip_gen: v6e
topology: v6e:2x2x1
jax: 0.10.0
libtpu: 0.0.40
codegen_flags: <defaults>
</compile_context>

<pallas_src>
import functools

import jax
import jax.numpy as jnp
from jax.experimental import pallas as pl
from jax.experimental.pallas import tpu as pltpu


def _round_up(x, m):
    return ((x + m - 1) // m) * m


def _linreg_kernel(x_ref, wt_ref, b_ref, o_ref):
    # x_ref:  (TB, Din_p)     VMEM   (packed rows of x)
    # wt_ref: (Din_p, Dout_p) VMEM   (block-diagonal packed W^T, grid-resident)
    # b_ref:  (1, Dout_p)     VMEM   (grid-resident, broadcast over rows)
    # o_ref:  (TB, Dout_p)    VMEM   (dense 128-lane output slab)
    acc = jnp.dot(x_ref[...], wt_ref[...], preferred_element_type=jnp.float32)
    o_ref[...] = (acc + b_ref[...]).astype(o_ref.dtype)


_SMALL_BATCH = 64            # below this: plain XLA fuses better than a launch
_TILE_BYTE_BUDGET = 8 << 20  # x-tile + out-tile bytes (before double-buffering)


@functools.partial(jax.jit, static_argnames=("pack", "d_out"))
def _linear_packed(x, wt_packed, bias_packed, *, pack, d_out):
    """y = x @ W^T + b in a lane-dense packed layout.

    x:           (B, d_in)
    wt_packed:   (pack*d_in, pack*d_out)  block-diagonal copies of W^T
    bias_packed: (1, pack*d_out)
    returns      (B, d_out)
    """
    B, d_in = x.shape
    d_in_p, d_out_p = wt_packed.shape

    # Pad B to a multiple of `pack` (zero rows; sliced off at the end).
    b_pad = _round_up(B, pack)
    if b_pad != B:
        x = jnp.pad(x, ((0, b_pad - B), (0, 0)))
    rows = b_pad // pack
    xp = x.reshape(rows, d_in_p)          # row-major => contiguous, free

    # Row tiling: big tiles to amortize the ~0.35us per-grid-step overhead,
    # but always >=2 steps once rows >= 16 so v7x's two TensorCores can split
    # the "parallel" batch axis (negligible cost on 1-TC v5e/v6e).
    bytes_per_row = (d_in_p + d_out_p) * 4
    tb_max = max(8, (_TILE_BYTE_BUDGET // (2 * bytes_per_row)) // 8 * 8)
    if rows >= 16:
        tb = min(tb_max, _round_up(pl.cdiv(rows, 2), 8))
    else:
        tb = rows                          # full-dim block is always legal
    grid = (pl.cdiv(rows, tb),)

    cost = pl.CostEstimate(
        flops=2 * rows * d_in_p * d_out_p,
        transcendentals=0,
        bytes_accessed=4 * (rows * d_in_p + d_in_p * d_out_p
                            + d_out_p + rows * d_out_p),
    )

    yp = pl.pallas_call(
        _linreg_kernel,
        out_shape=jax.ShapeDtypeStruct((rows, d_out_p), x.dtype),
        grid=grid,
        in_specs=[
            pl.BlockSpec((tb, d_in_p), lambda i: (i, 0)),       # x: tiled rows
            pl.BlockSpec((d_in_p, d_out_p), lambda i: (0, 0)),  # W': resident
            pl.BlockSpec((1, d_out_p), lambda i: (0, 0)),       # bias: resident
        ],
        out_specs=pl.BlockSpec((tb, d_out_p), lambda i: (i, 0)),
        compiler_params=pltpu.CompilerParams(
            dimension_semantics=("parallel",),      # megacore split on v7x
            vmem_limit_bytes=32 * 1024 * 1024,      # explicit, safe on v5e..v7x
        ),
        cost_estimate=cost,
    )(xp, wt_packed, bias_packed)

    y = yp.reshape(b_pad, d_out)           # bit-identical re-view of the slab
    return y[:B] if b_pad != B else y


@jax.jit
def _linear_small(x, weight_t, bias2d):
    # Small-problem fast path: launch + DMA setup dwarfs the work; let XLA fuse.
    return jnp.dot(x, weight_t) + bias2d


class Dummy:
    """Matches the PyTorch Dummy: .mean and .stddev (all ones, built lazily)."""

    def __init__(self, mean):
        self.mean = mean
        self._stddev = None

    @property
    def stddev(self):
        if self._stddev is None:
            self._stddev = jnp.ones_like(self.mean)
        return self._stddev


class TrajEncoderLinRegPallas:
    """JAX/Pallas port of TrajEncoderLinReg."""

    def __init__(self, traj_encoder_obs_dim, output_dim, key):
        d_in, d_out = traj_encoder_obs_dim, output_dim

        # nn.init.eye_ on the (output_dim, obs_dim) weight:
        weight = jnp.eye(d_out, d_in, dtype=jnp.float32)
        # PyTorch Linear bias default U(-1/sqrt(fan_in), 1/sqrt(fan_in));
        # deterministic synthetic init here (no checkpoint).
        bound = 1.0 / (d_in ** 0.5)
        bias = jax.random.uniform(key, (d_out,), jnp.float32,
                                  minval=-bound, maxval=bound)

        self.weight = weight
        self.bias = bias
        self.d_out = d_out
        self.weight_t = jnp.asarray(weight.T)        # (d_in, d_out)
        self.bias2d = bias.reshape(1, d_out)

        # Lane-dense packing factor: pick `pack` so pack*d_out == 128 exactly.
        if d_out < 128 and 128 % d_out == 0:
            self.pack = 128 // d_out
        else:
            self.pack = 1    # already lane-friendly / oddball dim: no packing
        if self.pack > 1:
            self.wt_packed = jnp.kron(
                jnp.eye(self.pack, dtype=jnp.float32), self.weight_t)
            self.bias_packed = jnp.tile(self.bias2d, (1, self.pack))
        else:
            self.wt_packed = self.weight_t
            self.bias_packed = self.bias2d

    def __call__(self, x):
        unsqueezed = (x.ndim == 1)
        if unsqueezed:
            x = x[None, :]
        if x.shape[0] < _SMALL_BATCH:
            y = _linear_small(x, self.weight_t, self.bias2d)
        else:
            y = _linear_packed(x, self.wt_packed, self.bias_packed,
                               pack=self.pack, d_out=self.d_out)
        if unsqueezed:
            y = y[0]
        return Dummy(y)


if __name__ == "__main__":
    key = jax.random.PRNGKey(0)
    k_bias, k_x, k_pad, k_small, k_x1d = jax.random.split(key, 5)

    traj_encoder_obs_dim = 32
    output_dim = 16
    module = TrajEncoderLinRegPallas(traj_encoder_obs_dim, output_dim, k_bias)

    def ref_fwd(z):
        return z @ module.weight.T + module.bias

    # Main path: packed Pallas kernel (rows = 256/8 = 32, 2 parallel steps).
    x = jax.random.normal(k_x, (256, traj_encoder_obs_dim), jnp.float32)
    out = module(x)
    jax.block_until_ready(out.mean)
    jax.block_until_ready(out.stddev)
    assert out.mean.shape == (256, output_dim)
    assert out.stddev.shape == (256, output_dim)
    assert jnp.allclose(out.mean, ref_fwd(x), atol=1e-5, rtol=1e-5)
    assert jnp.allclose(out.stddev, jnp.ones_like(out.mean))

    # Batch not a multiple of the pack factor (exercises pad + slice).
    xp = jax.random.normal(k_pad, (203, traj_encoder_obs_dim), jnp.float32)
    outp = module(xp)
    jax.block_until_ready(outp.mean)
    assert outp.mean.shape == (203, output_dim)
    assert jnp.allclose(outp.mean, ref_fwd(xp), atol=1e-5, rtol=1e-5)

    # Small-batch fast path.
    xs = jax.random.normal(k_small, (8, traj_encoder_obs_dim), jnp.float32)
    outs = module(xs)
    jax.block_until_ready(outs.mean)
    assert jnp.allclose(outs.mean, ref_fwd(xs), atol=1e-5, rtol=1e-5)

    # 1-D (unsqueezed) input path.
    x1 = jax.random.normal(k_x1d, (traj_encoder_obs_dim,), jnp.float32)
    out1 = module(x1)
    jax.block_until_ready(out1.mean)
    assert out1.mean.shape == (output_dim,)
    assert jnp.allclose(out1.mean, ref_fwd(x1), atol=1e-5, rtol=1e-5)

    print("KERNEL_OK")
</pallas_src>

<mosaic_0001>
module attributes {stable_mosaic.version = 11 : i64} {
  func.func @_linreg_kernel(%arg0: i32, %arg1: memref<16x256xf32, #tpu.memory_space<vmem>>, %arg2: memref<256x128xf32, #tpu.memory_space<vmem>>, %arg3: memref<1x128xf32, #tpu.memory_space<vmem>>, %arg4: memref<16x128xf32, #tpu.memory_space<vmem>>) attributes {dimension_semantics = [#tpu.dimension_semantics<parallel>], iteration_bounds = array<i64: 2>, scalar_prefetch = 0 : i64, scratch_operands = 0 : i64, tpu.core_type = #tpu.core_type<tc>, window_params = [{transform_indices = @transform_0, window_bounds = array<i64: 16, 256>}, {pipeline_mode = #tpu.pipeline_mode<synchronous>, transform_indices = @transform_1, window_bounds = array<i64: 256, 128>}, {pipeline_mode = #tpu.pipeline_mode<synchronous>, transform_indices = @transform_2, window_bounds = array<i64: 1, 128>}, {transform_indices = @transform_3, window_bounds = array<i64: 16, 128>}]} {
    %c0 = arith.constant 0 : index
    %c0_0 = arith.constant 0 : index
    %0 = vector.load %arg1[%c0, %c0_0] : memref<16x256xf32, #tpu.memory_space<vmem>>, vector<16x256xf32>
    %c0_1 = arith.constant 0 : index
    %c0_2 = arith.constant 0 : index
    %1 = vector.load %arg2[%c0_1, %c0_2] : memref<256x128xf32, #tpu.memory_space<vmem>>, vector<256x128xf32>
    %cst = arith.constant dense<0.000000e+00> : vector<16x128xf32>
    %2 = tpu.matmul %0, %1, %cst {dimension_numbers = #tpu.dot_dimension_numbers<[1], [0], [0], [1], [0, 0, 1, 1], [], []>} : vector<16x256xf32>, vector<256x128xf32>, vector<16x128xf32> -> vector<16x128xf32>
    %c0_3 = arith.constant 0 : index
    %c0_4 = arith.constant 0 : index
    %3 = vector.load %arg3[%c0_3, %c0_4] : memref<1x128xf32, #tpu.memory_space<vmem>>, vector<1x128xf32>
    %4 = vector.broadcast %3 : vector<1x128xf32> to vector<16x128xf32>
    %5 = arith.addf %2, %4 : vector<16x128xf32>
    %c0_5 = arith.constant 0 : index
    %c0_6 = arith.constant 0 : index
    %6 = vector.load %arg4[%c0_5, %c0_6] : memref<16x128xf32, #tpu.memory_space<vmem>>, vector<16x128xf32>
    tpu.vector_store %arg4[%c0_5, %c0_6], %5 {strides = array<i32>} : memref<16x128xf32, #tpu.memory_space<vmem>>, vector<16x128xf32>,
    return
  }
  func.func @transform_0(%arg0: i32) -> (i32, i32) {
    %c0_i32 = arith.constant 0 : i32
    %c0_i32_0 = arith.constant 0 : i32
    return %arg0, %c0_i32 : i32, i32
  }
  func.func @transform_1(%arg0: i32) -> (i32, i32) {
    %c0_i32 = arith.constant 0 : i32
    %c0_i32_0 = arith.constant 0 : i32
    %c0_i32_1 = arith.constant 0 : i32
    return %c0_i32, %c0_i32_0 : i32, i32
  }
  func.func @transform_2(%arg0: i32) -> (i32, i32) {
    %c0_i32 = arith.constant 0 : i32
    %c0_i32_0 = arith.constant 0 : i32
    %c0_i32_1 = arith.constant 0 : i32
    return %c0_i32, %c0_i32_0 : i32, i32
  }
  func.func @transform_3(%arg0: i32) -> (i32, i32) {
    %c0_i32 = arith.constant 0 : i32
    %c0_i32_0 = arith.constant 0 : i32
    return %arg0, %c0_i32 : i32, i32
  }
}

</mosaic_0001>

<bundles_post_ra>
// kernel: _linear_packed.1
= control target key start
LH: loop header
LB: loop body
LE: loop exit
PB: predicated region body
PF: predicated region fallthrough
CT: control target
= control target key end

     0   :  { %s473_s12 = smov 0   ;;  %s595_s0 = inlined_call_operand.vmem [shape: f32[32,256], index: 0, kind: input, shape index: {}]   ;;  %s596_s1 = inlined_call_operand.vmem [shape: f32[256,128], index: 1, kind: input, shape index: {}]   ;;  %s597_s2 = inlined_call_operand.vmem [shape: f32[1,128], index: 2, kind: input, shape index: {}]   ;;  %s598_s3 = inlined_call_operand.vmem [shape: f32[32,128], index: 3, kind: output, shape index: {}]  }
   0x1 LB: > { %s353_s13 = sadd.s32 4294967295, %s451_s12   ;;  %p357_p0 = scmp.ge.s32.totalorder %s451_s12, 1  ;;  %s451_s12 = sphi %s473_s12, %s13_s12  }
   0x2   : > { %p139_p1 = scmp.lt.s32.totalorder %s451_s12, 3 }
   0x4   : > { %p140_p2 = pnand %p357_p0, %p139_p1 }
   0x5   : > { %s358_s21 = sshll.u32 (!%p140_p2), %s353_s13, 1 }
   0x6   : > { %143 = sbr.rel (%p140_p2) target bundleno = 245 (0xf5), region = 32  ;;  %p165_p3 = scmp.lt.s32.totalorder (!%p140_p2), %s358_s21, 3 }
   0xb   : > { %v212_v0 = vld [vmem:[%s596_s1 + $0xf8] sm:$0xff]  ;;  %v211_v2 = vld [vmem:[%s596_s1 + $0xf0] sm:$0xff]  ;;  %v210_v4 = vld [vmem:[%s596_s1 + $0xe8] sm:$0xff]  ;;  %s600_s21 = smov (!%p165_p3, %s358_s21), 3 }
   0xc   : > { %v196_v1 = vld [vmem:[%s596_s1 + $0x78] sm:$0xff]  ;;  %367 = vmatprep.subr.mxu0 %v212_v0  ;;  %405 = vmatprep.subr.mxu1 %v212_v0  ;;  %v195_v3 = vld [vmem:[%s596_s1 + $0x70] sm:$0xff]  ;;  %v194_v5 = vld [vmem:[%s596_s1 + $0x68] sm:$0xff]  ;;  %s366_s18 = sshll.u32 %s600_s21, 4  ;;  %s362_s5 = sshll.u32 %s600_s21, 3 }
   0xd   : > { %368 = vmatpush3.msra.mxu0 %v196_v1  ;;  %421 = vmatpush3.msra.mxu1 %v196_v1  ;;  %v209_v6 = vld [vmem:[%s596_s1 + $0xe0] sm:$0xff]  ;;  %v208_v8 = vld [vmem:[%s596_s1 + $0xd8] sm:$0xff]  ;;  %v207_v10 = vld [vmem:[%s596_s1 + $0xd0] sm:$0xff]  ;;  %s169_s13 = scalar_lea.vmem %s595_s0, %s366_s18  ;;  %s175_s10 = scalar_lea.vmem %s598_s3, %s362_s5 }
   0xe   : > { %369 = vmatprep.subr.mxu0 %v211_v2  ;;  %406 = vmatprep.subr.mxu1 %v211_v2  ;;  %v193_v7 = vld [vmem:[%s596_s1 + $0x60] sm:$0xff]  ;;  %v192_v9 = vld [vmem:[%s596_s1 + $0x58] sm:$0xff]  ;;  %v191_v11 = vld [vmem:[%s596_s1 + $0x50] sm:$0xff] }
   0xf   : > { %370 = vmatpush3.msra.mxu0 %v195_v3  ;;  %422 = vmatpush3.msra.mxu1 %v195_v3  ;;  %v206_v12 = vld [vmem:[%s596_s1 + $0xc8] sm:$0xff]  ;;  %v205_v14 = vld [vmem:[%s596_s1 + $0xc0] sm:$0xff]  ;;  %v204_v16 = vld [vmem:[%s596_s1 + $0xb8] sm:$0xff] }
  0x10   : > { %371 = vmatprep.subr.mxu0 %v210_v4  ;;  %407 = vmatprep.subr.mxu1 %v210_v4  ;;  %v190_v13 = vld [vmem:[%s596_s1 + $0x48] sm:$0xff]  ;;  %v189_v15 = vld [vmem:[%s596_s1 + $0x40] sm:$0xff]  ;;  %v188_v17 = vld [vmem:[%s596_s1 + $0x38] sm:$0xff] }
  0x11   : > { %372 = vmatpush3.msra.mxu0 %v194_v5  ;;  %423 = vmatpush3.msra.mxu1 %v194_v5  ;;  %v203_v18 = vld [vmem:[%s596_s1 + $0xb0] sm:$0xff]  ;;  %v202_v20 = vld [vmem:[%s596_s1 + $0xa8] sm:$0xff]  ;;  %v201_v22 = vld [vmem:[%s596_s1 + $0xa0] sm:$0xff] }
  0x12   : > { %373 = vmatprep.subr.mxu0 %v209_v6  ;;  %408 = vmatprep.subr.mxu1 %v209_v6  ;;  %v187_v19 = vld [vmem:[%s596_s1 + $0x30] sm:$0xff]  ;;  %v186_v21 = vld [vmem:[%s596_s1 + $0x28] sm:$0xff]  ;;  %v185_v23 = vld [vmem:[%s596_s1 + $0x20] sm:$0xff] }
  0x13   : > { %374 = vmatpush3.msra.mxu0 %v193_v7  ;;  %424 = vmatpush3.msra.mxu1 %v193_v7  ;;  %v200_v24 = vld [vmem:[%s596_s1 + $0x98] sm:$0xff]  ;;  %v199_v26 = vld [vmem:[%s596_s1 + $0x90] sm:$0xff]  ;;  %v198_v28 = vld [vmem:[%s596_s1 + $0x88] sm:$0xff] }
  0x14   : > { %375 = vmatprep.subr.mxu0 %v208_v8  ;;  %409 = vmatprep.subr.mxu1 %v208_v8  ;;  %v184_v25 = vld [vmem:[%s596_s1 + $0x18] sm:$0xff]  ;;  %v183_v27 = vld [vmem:[%s596_s1 + $0x10] sm:$0xff]  ;;  %v182_v29 = vld [vmem:[%s596_s1 + $0x8] sm:$0xff] }
  0x15   : > { %376 = vmatpush3.msra.mxu0 %v192_v9  ;;  %425 = vmatpush3.msra.mxu1 %v192_v9  ;;  %v197_v30 = vld [vmem:[%s596_s1 + $0x80] sm:$0xff]  ;;  %v178_v32 = vld [vmem:[%s169_s13 + $0x8] sm:$0xff]  ;;  %v180_v33 = vld [vmem:[%s169_s13 + $0x18] sm:$0xff] }
  0x16   : > { %377 = vmatprep.subr.mxu0 %v207_v10  ;;  %410 = vmatprep.subr.mxu1 %v207_v10  ;;  %v181_v31 = vld [vmem:[%s596_s1] sm:$0xff]  ;;  %v179_v35 = vld [vmem:[%s169_s13 + $0x10] sm:$0xff] }
  0x17   : > { %378 = vmatpush3.msra.mxu0 %v191_v11  ;;  %426 = vmatpush3.msra.mxu1 %v191_v11  ;;  %v177_v34 = vld [vmem:[%s169_s13] sm:$0xff] }
  0x18   : > { %379 = vmatprep.subr.mxu0 %v206_v12  ;;  %411 = vmatprep.subr.mxu1 %v206_v12  ;;  %v363_v38 = vld [vmem:[%s597_s2] ss:$0 sm:$0xff] }
  0x19   : > { %380 = vmatpush3.msra.mxu0 %v190_v13  ;;  %427 = vmatpush3.msra.mxu1 %v190_v13 }
  0x1a   : > { %381 = vmatprep.subr.mxu0 %v205_v14  ;;  %412 = vmatprep.subr.mxu1 %v205_v14 }
  0x1b   : > { %382 = vmatpush3.msra.mxu0 %v189_v15  ;;  %428 = vmatpush3.msra.mxu1 %v189_v15 }
  0x1c   : > { %383 = vmatprep.subr.mxu0 %v204_v16  ;;  %413 = vmatprep.subr.mxu1 %v204_v16 }
  0x1d   : > { %384 = vmatpush3.msra.mxu0 %v188_v17  ;;  %429 = vmatpush3.msra.mxu1 %v188_v17 }
  0x1e   : > { %385 = vmatprep.subr.mxu0 %v203_v18  ;;  %414 = vmatprep.subr.mxu1 %v203_v18 }
  0x1f   : > { %386 = vmatpush3.msra.mxu0 %v187_v19  ;;  %430 = vmatpush3.msra.mxu1 %v187_v19 }
  0x20   : > { %387 = vmatprep.subr.mxu0 %v202_v20  ;;  %415 = vmatprep.subr.mxu1 %v202_v20 }
  0x21   : > { %388 = vmatpush3.msra.mxu0 %v186_v21  ;;  %431 = vmatpush3.msra.mxu1 %v186_v21 }
  0x22   : > { %389 = vmatprep.subr.mxu0 %v201_v22  ;;  %416 = vmatprep.subr.mxu1 %v201_v22 }
  0x23   : > { %390 = vmatpush3.msra.mxu0 %v185_v23  ;;  %432 = vmatpush3.msra.mxu1 %v185_v23 }
  0x24   : > { %391 = vmatprep.subr.mxu0 %v200_v24  ;;  %417 = vmatprep.subr.mxu1 %v200_v24 }
  0x25   : > { %392 = vmatpush3.msra.mxu0 %v184_v25  ;;  %433 = vmatpush3.msra.mxu1 %v184_v25 }
  0x26   : > { %393 = vmatprep.subr.mxu0 %v199_v26  ;;  %418 = vmatprep.subr.mxu1 %v199_v26 }
  0x27   : > { %394 = vmatpush3.msra.mxu0 %v183_v27  ;;  %434 = vmatpush3.msra.mxu1 %v183_v27 }
  0x28   : > { %395 = vmatprep.subr.mxu0 %v198_v28  ;;  %419 = vmatprep.subr.mxu1 %v198_v28 }
  0x29   : > { %396 = vmatpush3.msra.mxu0 %v182_v29  ;;  %435 = vmatpush3.msra.mxu1 %v182_v29 }
  0x2a   : > { %397 = vmatprep.subr.mxu0 %v197_v30  ;;  %420 = vmatprep.subr.mxu1 %v197_v30 }
  0x2b   : > { %398 = vmatpush3.msra.mxu0 %v181_v31  ;;  %436 = vmatpush3.msra.mxu1 %v181_v31 }
  0x2c   : > { %284 = vmatprep.mubr.f32.mxu0 %v178_v32  ;;  %289 = vmatprep.mubr.f32.mxu1 %v180_v33 }
  0x2d   : > { %285 = vmatmul.mubr.f32.vlgmr.msra.gmra.mxu0 %v177_v34  ;;  %290 = vmatmul.mubr.f32.vlgmr.msra.gmra.mxu1 %v179_v35 }
  0xed   : > { %v399_v36 = vpop.f32.mrf.mxu0  ;;  %v402_v37 = vpop.f32.mrf.mxu1 }
  0xef   : > { %v400_v39 = vpop.f32.mrf.mxu0  ;;  %v403_v40 = vpop.f32.mrf.mxu1 }
  0xf0   : > { %v401_v41 = vadd.f32 %v400_v39, %v399_v36  ;;  %v404_v42 = vadd.f32 %v403_v40, %v402_v37 }
  0xf2   : > { %v287_v43 = vadd.f32 %v401_v41, %v363_v38  ;;  %v292_v44 = vadd.f32 %v404_v42, %v363_v38 }
  0xf4   : > { %295 = vst [vmem:[%s175_s10] sm:$0xff] %v287_v43  ;;  %296 = vst [vmem:[%s175_s10 + $0x8] sm:$0xff] %v292_v44 }
  0xf5 PF: > { %s13_s12 = sadd.s32 1, %s451_s12  }
  0xf6   : > { %p10_p4 = scmp.ge.s32.totalorder %s13_s12, 4  }
  0xf8   :  { %12 = sbr.rel (!%p10_p4) target bundleno = 1 (0x1), region = 62 }

</bundles_post_ra>
